<compile_context>
chip_gen: v7x
topology: tpu7x:2x2x1
jax: 0.10.0
libtpu: 0.0.40
codegen_flags: <defaults>
</compile_context>

<pallas_src>
import jax
import jax.numpy as jnp
import numpy as np
from jax.experimental import pallas as pl
from jax.experimental.pallas import tpu as pltpu

# ----- synthetic hyper-parameters (shapes implied by the nn.Module __init__) --
VOCAB = 100          # vocabulary_size
EMB = 32             # embedding_dimension
FILTER_NUM = 8       # filter_num
FILTER_SIZES = (3, 4, 5)
CLASS_NUM = 4        # class_num
SEQ_LEN = 16
BATCH = 2

K_MAX = max(FILTER_SIZES)
N_FILT = len(FILTER_SIZES) * FILTER_NUM          # 24
N_PAD = 128                                      # lane-dense fused conv / FC N
V_PAD = 128                                      # lane-dense padded vocab
B_PAD = 8                                        # sublane-dense output rows
BT = BATCH * SEQ_LEN                             # flattened (b, t) rows (32)
KV = K_MAX * V_PAD                               # fused one-hot width (640)
PAD_ID = V_PAD - 1                               # >= VOCAB -> zero fused row


def textcnn_kernel(tok_ref, wfused_ref, mask_ref, bconv_ref, wfc_ref, bfc_ref,
                   out_ref):
    # --- shifted one-hot over the fused (embedding x conv) weight ------------
    # tok_ref[r, i] = token_id(b, t + i) + i * V_PAD  (pad windows -> PAD_ID,
    # which selects a zero row of wfused).
    tok = tok_ref[...]                                            # (BT, K_MAX)
    col = jax.lax.broadcasted_iota(jnp.int32, (BT, KV), 1)        # (BT, 640)
    match = col == tok[:, 0:1]
    for i in range(1, K_MAX):
        match = jnp.logical_or(match, col == tok[:, i:i + 1])
    onehot = match.astype(jnp.bfloat16)                           # (BT, 640)

    # --- embedding + all conv branches as ONE bf16 MXU matmul (K = 5 x 128) --
    conv = jnp.dot(onehot, wfused_ref[...],
                   preferred_element_type=jnp.float32)            # (BT, 128)

    # --- additive {0, -1e30} validity mask, max-pool over time (sublanes) ----
    conv = conv + mask_ref[...]
    pooled = jnp.max(conv.reshape(BATCH, SEQ_LEN, N_PAD), axis=1)  # (B, 128)

    # conv bias is time-invariant -> add after the pool; ReLU in f32.
    feat = jnp.maximum(pooled + bconv_ref[...], 0.0)              # (B, 128)

    # TODO(synk): dropout (identity at inference) omitted.

    # --- final Linear in bf16 x bf16, padded to a full (8, 128) vreg store ---
    feat8 = jnp.concatenate(
        [feat, jnp.zeros((B_PAD - BATCH, N_PAD), jnp.float32)], axis=0)
    logits = jnp.dot(feat8.astype(jnp.bfloat16), wfc_ref[...],
                     preferred_element_type=jnp.float32) + bfc_ref[...]
    out_ref[...] = logits                                         # (8, 128)


def _prep_params(emb_table, conv_ws, conv_bs, wfc, bfc):
    """Fuse / pad / bf16-cast parameters in the wrapper (done once)."""
    emb_pad = jnp.zeros((V_PAD, EMB), jnp.float32).at[:VOCAB].set(emb_table)

    # Per-shift conv weight blocks (zero rows for shifts >= filter size).
    wconv = jnp.zeros((K_MAX * EMB, N_PAD), jnp.float32)
    bconv = jnp.zeros((1, N_PAD), jnp.float32)
    thresh = np.full((N_PAD,), SEQ_LEN - 1, np.int32)
    for idx, (k, w, b) in enumerate(zip(FILTER_SIZES, conv_ws, conv_bs)):
        c0 = idx * FILTER_NUM
        wconv = wconv.at[:k * EMB, c0:c0 + FILTER_NUM].set(
            w.reshape(k * EMB, FILTER_NUM))
        bconv = bconv.at[:, c0:c0 + FILTER_NUM].set(b)
        thresh[c0:c0 + FILTER_NUM] = SEQ_LEN - k

    # Fold the embedding into the conv weight:
    #   wfused[i*V_PAD + v, :] = emb_pad[v] @ wconv[i*EMB:(i+1)*EMB, :]
    wfused = jnp.concatenate(
        [emb_pad @ wconv[i * EMB:(i + 1) * EMB, :] for i in range(K_MAX)],
        axis=0).astype(jnp.bfloat16)                    # (K_MAX*V_PAD, N_PAD)

    # Additive time-validity mask: 0 where a window is valid, -1e30 otherwise.
    t_idx = np.arange(BT, dtype=np.int32) % SEQ_LEN
    mask_add = jnp.asarray(
        np.where(t_idx[:, None] <= thresh[None, :], 0.0, -1e30), jnp.float32)

    wfc_pad = jnp.zeros((N_PAD, N_PAD), jnp.float32)
    wfc_pad = wfc_pad.at[:N_FILT, :CLASS_NUM].set(wfc).astype(jnp.bfloat16)
    bfc_pad = jnp.zeros((1, N_PAD), jnp.float32).at[:, :CLASS_NUM].set(bfc)
    return wfused, mask_add, bconv, wfc_pad, bfc_pad


def _prep_tokens(tokens):
    """Pre-shifted, block-offset token columns: (BT, K_MAX) i32.

    Column i holds token(b, t+i) + i*V_PAD; positions past the end of a
    sequence get PAD_ID (a zero fused-embedding row) so windows can never
    read across the batch boundary."""
    tok = tokens.astype(jnp.int32)                                # (B, L)
    cols = []
    for i in range(K_MAX):
        if i == 0:
            shifted = tok
        else:
            pad = jnp.full((BATCH, i), PAD_ID, jnp.int32)
            shifted = jnp.concatenate([tok[:, i:], pad], axis=1)
        cols.append(shifted.reshape(BT) + i * V_PAD)
    return jnp.stack(cols, axis=1)                                # (BT, K_MAX)


def textcnn_forward(tokens, emb_table, conv_ws, conv_bs, wfc, bfc):
    wfused, mask_add, bconv, wfc_pad, bfc_pad = _prep_params(
        emb_table, conv_ws, conv_bs, wfc, bfc)
    tok_shift = _prep_tokens(tokens)

    inputs = (tok_shift, wfused, mask_add, bconv, wfc_pad, bfc_pad)
    # NOTE: at BATCH=2 this call is launch-/latency-bound; for real serving,
    # pack many sequences per call (grow BT toward >=128/256 MXU rows) and add
    # a batch grid with dimension_semantics=("parallel",) so v7x's two
    # TensorCores split it.  VMEM footprint (~250 KB) needs no tuning.
    out = pl.pallas_call(
        textcnn_kernel,
        out_shape=jax.ShapeDtypeStruct((B_PAD, N_PAD), jnp.float32),
        in_specs=[pl.BlockSpec(memory_space=pltpu.MemorySpace.VMEM)] * len(inputs),
        out_specs=pl.BlockSpec(memory_space=pltpu.MemorySpace.VMEM),
    )(*inputs)
    return out[:BATCH, :CLASS_NUM]


def reference_forward(tokens, emb_table, conv_ws, conv_bs, wfc, bfc):
    """Pure-JAX reference of the module forward.  Shares the kernel's fused
    bf16 weight rounding so the comparison isolates structural correctness."""
    wfused, _, bconv, wfc_pad, bfc_pad = _prep_params(
        emb_table, conv_ws, conv_bs, wfc, bfc)
    wf = wfused.astype(jnp.float32)                               # (640, 128)
    pooled = []
    for idx, k in enumerate(FILTER_SIZES):
        c0 = idx * FILTER_NUM
        outs = []
        for t in range(SEQ_LEN - k + 1):
            acc = jnp.zeros((BATCH, FILTER_NUM), jnp.float32)
            for i in range(k):
                acc = acc + wf[i * V_PAD + tokens[:, t + i],
                               c0:c0 + FILTER_NUM]
            outs.append(acc)
        c = jnp.stack(outs, axis=1) + bconv[0, c0:c0 + FILTER_NUM]  # (B, T, F)
        c = jnp.maximum(c, 0.0)                                     # ReLU
        pooled.append(jnp.max(c, axis=1))                           # max-pool
    feat = jnp.concatenate(pooled, axis=-1)                         # (B, 24)
    feat = feat.astype(jnp.bfloat16).astype(jnp.float32)            # FC is bf16
    wfc_q = wfc_pad.astype(jnp.float32)[:N_FILT, :CLASS_NUM]
    return feat @ wfc_q + bfc_pad[0, :CLASS_NUM]


if __name__ == "__main__":
    key = jax.random.PRNGKey(0)
    keys = jax.random.split(key, 4 + 2 * len(FILTER_SIZES))

    # Deterministic synthetic parameters.
    emb_table = jax.random.normal(keys[0], (VOCAB, EMB), jnp.float32) * 0.1
    tokens = jax.random.randint(keys[1], (BATCH, SEQ_LEN), 0, VOCAB, jnp.int32)

    conv_ws, conv_bs = [], []
    for i, k in enumerate(FILTER_SIZES):
        # PyTorch Conv2d weight shape is (F, 1, k, E); re-layout to (k, E, F).
        w_torch = jax.random.normal(keys[2 + 2 * i], (FILTER_NUM, 1, k, EMB),
                                    jnp.float32) * 0.1
        conv_ws.append(jnp.transpose(w_torch[:, 0], (1, 2, 0)))   # (k, E, F)
        conv_bs.append(jax.random.normal(keys[3 + 2 * i], (1, FILTER_NUM),
                                         jnp.float32) * 0.1)

    # PyTorch Linear weight is (C, n*F); kernel uses its transpose (n*F, C).
    wfc_torch = jax.random.normal(keys[-2], (CLASS_NUM, N_FILT),
                                  jnp.float32) * 0.1
    wfc = wfc_torch.T
    bfc = jax.random.normal(keys[-1], (1, CLASS_NUM), jnp.float32) * 0.1

    logits = textcnn_forward(tokens, emb_table, conv_ws, conv_bs, wfc, bfc)
    logits = jax.block_until_ready(logits)

    expected = reference_forward(tokens, emb_table, conv_ws, conv_bs, wfc, bfc)
    np.testing.assert_allclose(np.asarray(logits), np.asarray(expected),
                               rtol=1e-3, atol=1e-3)
    print("KERNEL_OK")
</pallas_src>

<mosaic_0001>
module attributes {stable_mosaic.version = 11 : i64} {
  func.func @textcnn_kernel(%arg0: memref<32x5xi32, #tpu.memory_space<vmem>>, %arg1: memref<640x128xbf16, #tpu.memory_space<vmem>>, %arg2: memref<32x128xf32, #tpu.memory_space<vmem>>, %arg3: memref<1x128xf32, #tpu.memory_space<vmem>>, %arg4: memref<128x128xbf16, #tpu.memory_space<vmem>>, %arg5: memref<1x128xf32, #tpu.memory_space<vmem>>, %arg6: memref<8x128xf32, #tpu.memory_space<vmem>>) attributes {dimension_semantics = [], scalar_prefetch = 0 : i64, scratch_operands = 0 : i64, tpu.core_type = #tpu.core_type<tc>} {
    %c0 = arith.constant 0 : index
    %c0_0 = arith.constant 0 : index
    %0 = vector.load %arg0[%c0, %c0_0] : memref<32x5xi32, #tpu.memory_space<vmem>>, vector<32x5xi32>
    %1 = tpu.iota {dimensions = array<i32: 1>} : vector<32x640xi32>
    %2 = vector.extract_strided_slice %0 {offsets = [0, 0], sizes = [32, 1], strides = [1, 1]} : vector<32x5xi32> to vector<32x1xi32>
    %3 = vector.broadcast %2 : vector<32x1xi32> to vector<32x640xi32>
    %4 = arith.cmpi eq, %1, %3 : vector<32x640xi32>
    %5 = vector.extract_strided_slice %0 {offsets = [0, 1], sizes = [32, 1], strides = [1, 1]} : vector<32x5xi32> to vector<32x1xi32>
    %6 = vector.broadcast %5 : vector<32x1xi32> to vector<32x640xi32>
    %7 = arith.cmpi eq, %1, %6 : vector<32x640xi32>
    %8 = arith.ori %4, %7 : vector<32x640xi1>
    %9 = vector.extract_strided_slice %0 {offsets = [0, 2], sizes = [32, 1], strides = [1, 1]} : vector<32x5xi32> to vector<32x1xi32>
    %10 = vector.broadcast %9 : vector<32x1xi32> to vector<32x640xi32>
    %11 = arith.cmpi eq, %1, %10 : vector<32x640xi32>
    %12 = arith.ori %8, %11 : vector<32x640xi1>
    %13 = vector.extract_strided_slice %0 {offsets = [0, 3], sizes = [32, 1], strides = [1, 1]} : vector<32x5xi32> to vector<32x1xi32>
    %14 = vector.broadcast %13 : vector<32x1xi32> to vector<32x640xi32>
    %15 = arith.cmpi eq, %1, %14 : vector<32x640xi32>
    %16 = arith.ori %12, %15 : vector<32x640xi1>
    %17 = vector.extract_strided_slice %0 {offsets = [0, 4], sizes = [32, 1], strides = [1, 1]} : vector<32x5xi32> to vector<32x1xi32>
    %18 = vector.broadcast %17 : vector<32x1xi32> to vector<32x640xi32>
    %19 = arith.cmpi eq, %1, %18 : vector<32x640xi32>
    %20 = arith.ori %16, %19 : vector<32x640xi1>
    %21 = arith.extui %20 : vector<32x640xi1> to vector<32x640xi32>
    %22 = arith.sitofp %21 : vector<32x640xi32> to vector<32x640xf32>
    %23 = arith.truncf %22 : vector<32x640xf32> to vector<32x640xbf16>
    %c0_1 = arith.constant 0 : index
    %c0_2 = arith.constant 0 : index
    %24 = vector.load %arg1[%c0_1, %c0_2] : memref<640x128xbf16, #tpu.memory_space<vmem>>, vector<640x128xbf16>
    %cst = arith.constant dense<0.000000e+00> : vector<32x128xf32>
    %25 = tpu.matmul %23, %24, %cst {dimension_numbers = #tpu.dot_dimension_numbers<[1], [0], [0], [1], [0, 0, 1, 1], [], []>} : vector<32x640xbf16>, vector<640x128xbf16>, vector<32x128xf32> -> vector<32x128xf32>
    %c0_3 = arith.constant 0 : index
    %c0_4 = arith.constant 0 : index
    %26 = vector.load %arg2[%c0_3, %c0_4] : memref<32x128xf32, #tpu.memory_space<vmem>>, vector<32x128xf32>
    %27 = arith.addf %25, %26 : vector<32x128xf32>
    %28 = vector.shape_cast %27 : vector<32x128xf32> to vector<2x16x128xf32>
    %cst_5 = arith.constant dense<0xFF800000> : vector<2x128xf32>
    %29 = vector.multi_reduction <maximumf>, %28, %cst_5 [1] : vector<2x16x128xf32> to vector<2x128xf32>
    %c0_6 = arith.constant 0 : index
    %c0_7 = arith.constant 0 : index
    %30 = vector.load %arg3[%c0_6, %c0_7] : memref<1x128xf32, #tpu.memory_space<vmem>>, vector<1x128xf32>
    %31 = vector.broadcast %30 : vector<1x128xf32> to vector<2x128xf32>
    %32 = arith.addf %29, %31 : vector<2x128xf32>
    %cst_8 = arith.constant 0.000000e+00 : f32
    %33 = vector.broadcast %cst_8 : f32 to vector<2x128xf32>
    %34 = arith.maximumf %32, %33 : vector<2x128xf32>
    %cst_9 = arith.constant 0.000000e+00 : f32
    %35 = vector.broadcast %cst_9 : f32 to vector<6x128xf32>
    %36 = tpu.concatenate %34, %35 in 0 : vector<2x128xf32>, vector<6x128xf32> -> vector<8x128xf32>
    %37 = arith.truncf %36 : vector<8x128xf32> to vector<8x128xbf16>
    %c0_10 = arith.constant 0 : index
    %c0_11 = arith.constant 0 : index
    %38 = vector.load %arg4[%c0_10, %c0_11] : memref<128x128xbf16, #tpu.memory_space<vmem>>, vector<128x128xbf16>
    %cst_12 = arith.constant dense<0.000000e+00> : vector<8x128xf32>
    %39 = tpu.matmul %37, %38, %cst_12 {dimension_numbers = #tpu.dot_dimension_numbers<[1], [0], [0], [1], [0, 0, 1, 1], [], []>} : vector<8x128xbf16>, vector<128x128xbf16>, vector<8x128xf32> -> vector<8x128xf32>
    %c0_13 = arith.constant 0 : index
    %c0_14 = arith.constant 0 : index
    %40 = vector.load %arg5[%c0_13, %c0_14] : memref<1x128xf32, #tpu.memory_space<vmem>>, vector<1x128xf32>
    %41 = vector.broadcast %40 : vector<1x128xf32> to vector<8x128xf32>
    %42 = arith.addf %39, %41 : vector<8x128xf32>
    %c0_15 = arith.constant 0 : index
    %c0_16 = arith.constant 0 : index
    %43 = vector.load %arg6[%c0_15, %c0_16] : memref<8x128xf32, #tpu.memory_space<vmem>>, vector<8x128xf32>
    tpu.vector_store %arg6[%c0_15, %c0_16], %42 {strides = array<i32>} : memref<8x128xf32, #tpu.memory_space<vmem>>, vector<8x128xf32>,
    return
  }
}

</mosaic_0001>

<bundles_post_ra>
// kernel: tpu_custom_call.1
= control target key start
LH: loop header
LB: loop body
LE: loop exit
PB: predicated region body
PF: predicated region fallthrough
CT: control target
= control target key end

     0   :  { %11 = vsyncpa [#allocation3], 0  ;;  %s1819_s0 = inlined_call_operand.vmem [shape: s32[32,5], index: 0, kind: input, shape index: {}]   ;;  %s1820_s1 = inlined_call_operand.hbm [shape: bf16[640,128], index: 1, kind: input, shape index: {}]   ;;  %s1821_s2 = inlined_call_operand.vmem [shape: f32[32,128], index: 2, kind: input, shape index: {}]   ;;  %s1822_s3 = inlined_call_operand.vmem [shape: f32[1,128], index: 3, kind: input, shape index: {}]   ;;  %s1823_s4 = inlined_call_operand.hbm [shape: bf16[128,128], index: 4, kind: input, shape index: {}]   ;;  %s1824_s5 = inlined_call_operand.vmem [shape: f32[1,128], index: 5, kind: input, shape index: {}]   ;;  %s1825_s6 = inlined_call_operand.hbm [shape: f32[8,128], index: 6, kind: output, shape index: {}]  }
   0x1   :  { %12 = vsyncpa [#allocation6], 0 }
   0x2   :  { %13 = vsyncpa [#allocation4], 0  ;;  %s1321_s21 = smov [#allocation2]   ;;  %s1249_s25 = scalar_lea.hbm %s1820_s1, 5120 }
   0x3   :  { %s21_s22 = sshll.u32 %s1321_s21, 4  ;;  %p1250_p0 = scmp.ne.s32.totalorder %s1820_s1, %s1249_s25  ;;  %s22_s22 = int_to_ptr.vmem [resolvable:$true] %s21_s22 }
   0x4   :  { %p1253_p1 = scmp.lt.u32.totalorder %s1249_s25, %s1820_s1 }
   0x6   :  { %p1255_p2 = pnand %p1253_p1, %p1250_p0 }
   0x8   :  { %1258 = shalt.err (!%p1255_p2)
}
   0x9   :  { %s1259_s30 = scalar_lea.vmem %s22_s22, 5120  ;;  %p1264_p4 = scmp.lt.s32.totalorder %s22_s22, %s22_s22 }
   0xa   :  { %p1260_p3 = scmp.ne.s32.totalorder %s22_s22, %s1259_s30  ;;  %p1265_p5 = scmp.lt.s32.totalorder %s1259_s30, %s1259_s30 }
   0xc   :  { %p1266_p6 = por %p1265_p5, %p1264_p4 }
   0xe   :  { %p1267_p7 = pnand %p1266_p6, %p1260_p3 }
  0x10   :  { %1270 = shalt.err (!%p1267_p7)
}
  0x11   :  { %s1322_s7 = smov 64   ;;  %s1323_s8 = smov 4  }
  0x12   :  { %27 = dma.hbm_to_vmem [thread:$0]  %s1820_s1, 5120, %s22_s22, [#allocation3], %s1322_s7, %s1322_s7, %s1323_s8  }
  0x13   :  { %s1324_s11 = smov [#allocation5]   ;;  %s1271_s15 = scalar_lea.hbm %s1823_s4, 1024 }
  0x14   :  { %s37_s12 = sshll.u32 %s1324_s11, 4  ;;  %p1272_p8 = scmp.ne.s32.totalorder %s1823_s4, %s1271_s15  ;;  %s38_s12 = int_to_ptr.vmem [resolvable:$true] %s37_s12 }
  0x15   :  { %p1275_p9 = scmp.lt.u32.totalorder %s1271_s15, %s1823_s4 }
  0x17   :  { %p1277_p10 = pnand %p1275_p9, %p1272_p8 }
  0x19   :  { %1280 = shalt.err (!%p1277_p10)
}
  0x1a   :  { %s1281_s20 = scalar_lea.vmem %s38_s12, 1024  ;;  %p1286_p12 = scmp.lt.s32.totalorder %s38_s12, %s38_s12 }
  0x1b   :  { %p1282_p11 = scmp.ne.s32.totalorder %s38_s12, %s1281_s20  ;;  %p1287_p13 = scmp.lt.s32.totalorder %s1281_s20, %s1281_s20 }
  0x1d   :  { %p1288_p0 = por %p1287_p13, %p1286_p12 }
  0x1f   :  { %p1289_p1 = pnand %p1288_p0, %p1282_p11 }
  0x21   :  { %1292 = shalt.err (!%p1289_p1)
}
  0x22   :  { %43 = dma.hbm_to_vmem [thread:$0]  %s1823_s4, 1024, %s38_s12, [#allocation6], %s1322_s7, %s1322_s7, %s1323_s8  }
  0x23   :  { %1315 = dma.done.wait [#allocation3], 5120  }
  0x24   :  { %1316 = vsyncadd [#allocation3], 4294962176 }
  0x25   :  { %1317 = dma.done.wait [#allocation6], 1024  }
  0x26   :  { %1318 = vsyncadd [#allocation6], 4294966272  ;;  %v1325_v0 = vmov 2   ;;  %v1326_v1 = vmov 1   ;;  %v53_v2 = vld [vmem:[%s1819_s0] sm:$0xff]  ;;  %v54_v3 = vld [vmem:[%s1819_s0 + $0x8] sm:$0xff]  ;;  %v57_v43 = vlaneseq }
  0x27   :  { %1187 = vset.pattern.permute.xlu0 %v1325_v0  ;;  %1186 = vset.pattern.permute.xlu1 %v1326_v1  ;;  %v1201_v4 = vld [vmem:[#allocation2 + $0x40] sm:$0xff]   ;;  %v1327_v7 = vmov 3   ;;  %v1205_v9 = vld [vmem:[#allocation2 + $0x48] sm:$0xff]   ;;  %v1328_v13 = vmov 0   ;;  %v1209_v14 = vld [vmem:[#allocation2 + $0x50] sm:$0xff]   ;;  %v1329_v24 = vmov 4  }
  0x28   :  { %148 = vperm.xlu0 %1187, %v53_v2   ;;  %96 = vperm.xlu1 %1186, %v53_v2   ;;  %v1202_v5 = vld [vmem:[#allocation2 + $0xc0] sm:$0xff]   ;;  %v1206_v10 = vld [vmem:[#allocation2 + $0xc8] sm:$0xff]   ;;  %v1210_v15 = vld [vmem:[#allocation2 + $0xd0] sm:$0xff]   ;;  %v1330_v41 = vmov 0.0   ;;  %v1429_v46 = vand.u32 127, %v57_v43  ;;  %v1847_v43 = vmov 0 }
  0x29   :  { %1059 = vmatprep.subr.bf16.mxu0 %v1201_v4  ;;  %v1203_v6 = vld [vmem:[#allocation2] sm:$0xff]   ;;  %1087 = vmatprep.subr.bf16.mxu1 %v1202_v5  ;;  %v1207_v11 = vld [vmem:[#allocation2 + $0x8] sm:$0xff]   ;;  %v1211_v16 = vld [vmem:[#allocation2 + $0x10] sm:$0xff]   ;;  %s1332_s15 = smov [#allocation7]  }
  0x2a   :  { %v1204_v8 = vld [vmem:[#allocation2 + $0x80] sm:$0xff]   ;;  %1060 = vmatpush3.bf16.msra.mxu0 %v1203_v6  ;;  %v1208_v12 = vld [vmem:[#allocation2 + $0x88] sm:$0xff]   ;;  %v1212_v17 = vld [vmem:[#allocation2 + $0x90] sm:$0xff]   ;;  %v1436_v49 = vadd.s32 128, %v1429_v46  ;;  %v1441_v51 = vadd.s32 384, %v1429_v46 }
  0x2b   :  { %1088 = vmatpush3.bf16.msra.mxu1 %v1204_v8  ;;  %1061 = vmatprep.subr.bf16.mxu0 %v1205_v9  ;;  %v1406_v18 = vld [vmem:[%s1819_s0 + $0x10] sm:$0xff]  ;;  %v1213_v19 = vld [vmem:[#allocation2 + $0x58] sm:$0xff]   ;;  %v1217_v23 = vld [vmem:[#allocation2 + $0x60] sm:$0xff]  }
  0x2c   :  { %1190 = vset.pattern.permute.xlu0 %v1327_v7  ;;  %99 = vperm.xlu1 %1186, %v54_v3   ;;  %v1214_v20 = vld [vmem:[#allocation2 + $0xd8] sm:$0xff]   ;;  %v1218_v26 = vld [vmem:[#allocation2 + $0xe0] sm:$0xff]   ;;  %v1221_v29 = vld [vmem:[#allocation2 + $0x68] sm:$0xff]  }
  0x2d   :  { %203 = vperm.xlu0 %1190, %v54_v3   ;;  %1089 = vmatprep.subr.bf16.mxu1 %v1206_v10  ;;  %v1215_v21 = vld [vmem:[#allocation2 + $0x18] sm:$0xff]   ;;  %v1219_v27 = vld [vmem:[#allocation2 + $0x20] sm:$0xff]   ;;  %v1222_v30 = vld [vmem:[#allocation2 + $0xe8] sm:$0xff]  }
  0x2e   :  { %1062 = vmatpush3.bf16.msra.mxu0 %v1207_v11  ;;  %v1216_v22 = vld [vmem:[#allocation2 + $0x98] sm:$0xff]   ;;  %v1220_v28 = vld [vmem:[#allocation2 + $0xa0] sm:$0xff]   ;;  %v1223_v31 = vld [vmem:[#allocation2 + $0x28] sm:$0xff]  }
  0x2f   :  { %1090 = vmatpush3.bf16.msra.mxu1 %v1208_v12  ;;  %1063 = vmatprep.subr.bf16.mxu0 %v1209_v14  ;;  %v56_v25 = vld [vmem:[%s1819_s0 + $0x18] sm:$0xff]  ;;  %v1224_v32 = vld [vmem:[#allocation2 + $0xa8] sm:$0xff]   ;;  %v1225_v33 = vld [vmem:[#allocation2 + $0x70] sm:$0xff]  }
  0x30   :  { %1188 = vset.pattern.permute.xlu1 %v1325_v0  ;;  %1091 = vmatprep.subr.bf16.mxu1 %v1210_v15  ;;  %v1226_v34 = vld [vmem:[#allocation2 + $0xf0] sm:$0xff]   ;;  %v1229_v37 = vld [vmem:[#allocation2 + $0x78] sm:$0xff]   ;;  %v1421_v42 = vld [vmem:[#allocation2 + $0x100] sm:$0xff]   ;;  %v1573_v15 = vadd.s32 512, %v1429_v46 }
  0x31   :  { %1191 = vset.pattern.permute.xlu0 %v1328_v13  ;;  %151 = vperm.xlu1 %1188, %v54_v3   ;;  %v1227_v35 = vld [vmem:[#allocation2 + $0x30] sm:$0xff]   ;;  %v1230_v38 = vld [vmem:[#allocation2 + $0xf8] sm:$0xff]   ;;  %v1234_v8 = vld [vmem:[#allocation2 + $0x108] sm:$0xff]  }
  0x32   :  { %64 = vperm.xlu0 %1191, %v53_v2   ;;  %1064 = vmatpush3.bf16.msra.mxu0 %v1211_v16  ;;  %v1228_v36 = vld [vmem:[#allocation2 + $0xb0] sm:$0xff]   ;;  %v1231_v39 = vld [vmem:[#allocation2 + $0x38] sm:$0xff]   ;;  %v1245_v57 = vld [vmem:[#allocation5 + $0x20] sm:$0xff]  }
  0x33   :  { %1092 = vmatpush3.bf16.msra.mxu1 %v1212_v17  ;;  %1065 = vmatprep.subr.bf16.mxu0 %v1213_v19  ;;  %v1232_v40 = vld [vmem:[#allocation2 + $0xb8] sm:$0xff]   ;;  %v1235_v11 = vld [vmem:[#allocation2 + $0x110] sm:$0xff]  }
  0x34   :  { %1093 = vmatprep.subr.bf16.mxu1 %v1214_v20  ;;  %v1236_v17 = vld [vmem:[#allocation2 + $0x118] sm:$0xff]   ;;  %v1237_v20 = vld [vmem:[#allocation2 + $0x120] sm:$0xff]   ;;  %v1243_v55 = vld [vmem:[#allocation5 + $0x10] sm:$0xff]  }
  0x35   :  { %1189 = vset.pattern.permute.xlu1 %v1327_v7 }
  0x36   :  { %67 = vperm.xlu0 %1191, %v54_v3   ;;  %200 = vperm.xlu1 %1189, %v53_v2  }
  0x37   :  { %1066 = vmatpush3.bf16.msra.mxu0 %v1215_v21  ;;  %1094 = vmatpush3.bf16.msra.mxu1 %v1216_v22  ;;  %v436_v21 = vld [vmem:[%s1821_s2 + $0x18] sm:$0xff] }
  0x38   :  { %1067 = vmatprep.subr.bf16.mxu0 %v1217_v23  ;;  %1095 = vmatprep.subr.bf16.mxu1 %v1218_v26  ;;  %v1239_v26 = vld [vmem:[#allocation2 + $0x130] sm:$0xff]  }
  0x3a   :  { %1192 = vset.pattern.permute.xlu1 %v1329_v24  ;;  %70 = vperm.xlu0 %1191, %v1406_v18  }
  0x3b   :  { %252 = vperm.xlu1 %1192, %v53_v2   ;;  %1068 = vmatpush3.bf16.msra.mxu0 %v1219_v27  ;;  %v1531_v2 = vadd.s32 256, %v1429_v46 }
  0x3c   :  { %1096 = vmatpush3.bf16.msra.mxu1 %v1220_v28  ;;  %1069 = vmatprep.subr.bf16.mxu0 %v1221_v29  ;;  %v1834_v28 = vmov 0 }
  0x3d   :  { %1097 = vmatprep.subr.bf16.mxu1 %v1222_v30 }
  0x3e   :  { %1195 = vset.pattern.permute.xlu0 %v1326_v1 }
  0x3f   :  { %255 = vperm.xlu1 %1192, %v54_v3   ;;  %105 = vperm.xlu0 %1195, %v56_v25  }
  0x40   :  { %1070 = vmatpush3.bf16.msra.mxu0 %v1223_v31  ;;  %1098 = vmatpush3.bf16.msra.mxu1 %v1224_v32  ;;  %v1240_v32 = vld [vmem:[#allocation2 + $0x138] sm:$0xff]  }
  0x41   :  { %1071 = vmatprep.subr.bf16.mxu0 %v1225_v33  ;;  %1099 = vmatprep.subr.bf16.mxu1 %v1226_v34 }
  0x43   :  { %1193 = vset.pattern.permute.xlu1 %v1328_v13  ;;  %1197 = vset.pattern.permute.xlu0 %v1327_v7 }
  0x44   :  { %73 = vperm.xlu1 %1193, %v56_v25   ;;  %206 = vperm.xlu0 %1197, %v1406_v18  }
  0x45   :  { %1072 = vmatpush3.bf16.msra.mxu0 %v1227_v35  ;;  %1100 = vmatpush3.bf16.msra.mxu1 %v1228_v36  ;;  %v1839_v36 = vmov 0 }
  0x46   :  { %1073 = vmatprep.subr.bf16.mxu0 %v1229_v37  ;;  %1101 = vmatprep.subr.bf16.mxu1 %v1230_v38 }
  0x48   :  { %1194 = vset.pattern.permute.xlu1 %v1326_v1  ;;  %1200 = vset.pattern.permute.xlu0 %v1329_v24 }
  0x49   :  { %102 = vperm.xlu1 %1194, %v1406_v18   ;;  %261 = vperm.xlu0 %1200, %v56_v25  }
  0x4a   :  { %1074 = vmatpush3.bf16.msra.mxu0 %v1231_v39  ;;  %1102 = vmatpush3.bf16.msra.mxu1 %v1232_v40 }
  0x4b   :  { %1154 = vmatprep.subr.bf16.mxu1 %v1330_v41  ;;  %1134 = vmatprep.subr.bf16.mxu0 %v1421_v42 }
  0x4d   :  { %1196 = vset.pattern.permute.xlu1 %v1325_v0 }
  0x4e   :  { %154 = vperm.xlu1 %1196, %v1406_v18  }
  0x52   :  { %157 = vperm.xlu1 %1196, %v56_v25  }
  0x56   :  { %1198 = vset.pattern.permute.xlu1 %v1327_v7 }
  0x57   :  { %209 = vperm.xlu1 %1198, %v56_v25   ;;  %v1238_v25 = vld [vmem:[#allocation2 + $0x128] sm:$0xff]  }
  0x5b   :  { %1199 = vset.pattern.permute.xlu1 %v1329_v24 }
  0x5c   :  { %258 = vperm.xlu1 %1199, %v1406_v18  }
  0xa7   :  { %v1425_v44 = vpop.permute.xlu1 %96  ;;  %v1427_v45 = vpop.permute.xlu0 %148 }
  0xa8   :  { %vm160_vm0 = vcmp.eq.s32.totalorder %v1436_v49, %v1427_v45  ;;  %vm108_vm2 = vcmp.eq.s32.totalorder %v1436_v49, %v1425_v44  ;;  %vm162_vm5 = vcmp.eq.s32.totalorder %v1441_v51, %v1427_v45  ;;  %vm110_vm7 = vcmp.eq.s32.totalorder %v1441_v51, %v1425_v44 }
  0xab   :  { %v1431_v47 = vpop.permute.xlu1 %99 }
  0xac   :  { %v1433_v48 = vpop.permute.xlu0 %203  ;;  %vm113_vm10 = vcmp.eq.s32.totalorder %v1436_v49, %v1431_v47 }
  0xad   :  { %vm217_vm15 = vcmp.eq.s32.totalorder %v1436_v49, %v1433_v48 }
  0xb0   :  { %v1438_v50 = vpop.permute.xlu1 %151 }
  0xb1   :  { %v1443_v52 = vpop.permute.xlu0 %64  ;;  %vm165_vm13 = vcmp.eq.s32.totalorder %v1436_v49, %v1438_v50 }
  0xb2   :  { %vm76_vm1 = vcmp.eq.s32.totalorder %v1436_v49, %v1443_v52  ;;  %vm78_vm4 = vcmp.eq.s32.totalorder %v1441_v51, %v1443_v52 }
  0xb3   :  { %vm128_vm3 = vmor %vm76_vm1, %vm108_vm2 }
  0xb4   :  { %vm180_vm6 = vmor %vm128_vm3, %vm160_vm0 }
  0xb5   :  { %v1457_v53 = vpop.permute.xlu0 %67  ;;  %v1459_v54 = vpop.permute.xlu1 %200  ;;  %vm130_vm8 = vmor %vm78_vm4, %vm110_vm7  ;;  %vm115_vm4 = vcmp.eq.s32.totalorder %v1441_v51, %v1431_v47 }
  0xb6   :  { %vm81_vm9 = vcmp.eq.s32.totalorder %v1436_v49, %v1457_v53  ;;  %vm1465_vm11 = vmor %vm130_vm8, %vm162_vm5  ;;  %vm212_vm14 = vcmp.eq.s32.totalorder %v1436_v49, %v1459_v54  ;;  %vm83_vm1 = vcmp.eq.s32.totalorder %v1441_v51, %v1457_v53  ;;  %vm214_vm8 = vcmp.eq.s32.totalorder %v1441_v51, %v1459_v54 }
  0xb7   :  { %vm133_vm12 = vmor %vm81_vm9, %vm113_vm10  ;;  %vm219_vm10 = vcmp.eq.s32.totalorder %v1441_v51, %v1433_v48 }
  0xb8   :  { %vm185_vm0 = vmor %vm133_vm12, %vm165_vm13 }
  0xb9   :  { %vm232_vm2 = vmor %vm180_vm6, %vm212_vm14  ;;  %vm167_vm6 = vcmp.eq.s32.totalorder %v1441_v51, %v1438_v50  ;;  %v1561_v9 = vpop.permute.xlu0 %70 }
  0xba   :  { %v1477_v56 = vpop.permute.xlu1 %252  ;;  %vm1479_vm3 = vmor %vm185_vm0, %vm217_vm15  ;;  %vm75_vm0 = vcmp.eq.s32.totalorder %v1429_v46, %v1443_v52 }
  0xbb   :  { %vm264_vm5 = vcmp.eq.s32.totalorder %v1436_v49, %v1477_v56  ;;  %vm135_vm7 = vmor %vm83_vm1, %vm115_vm4  ;;  %vm266_vm13 = vcmp.eq.s32.totalorder %v1441_v51, %v1477_v56 }
  0xbc   :  { %vm284_vm9 = vmor %vm232_vm2, %vm264_vm5  ;;  %vm80_vm5 = vcmp.eq.s32.totalorder %v1429_v46, %v1457_v53 }
  0xbd   :  { %vm187_vm12 = vmor %vm135_vm7, %vm167_vm6  ;;  %v987_v59 = vsel %vm284_vm9, 1.0, %v1330_v41  ;;  %vm159_vm6 = vcmp.eq.s32.totalorder %v1429_v46, %v1427_v45 }
  0xbe   :  { %v1495_v58 = vpop.permute.xlu1 %255  ;;  %vm234_vm14 = vmor %vm1465_vm11, %vm214_vm8  ;;  %vm107_vm11 = vcmp.eq.s32.totalorder %v1429_v46, %v1425_v44  ;;  %v1568_v12 = vpop.permute.xlu0 %105 }
  0xbf   :  { %vm239_vm15 = vmor %vm187_vm12, %vm219_vm10  ;;  %vm269_vm1 = vcmp.eq.s32.totalorder %v1436_v49, %v1495_v58  ;;  %vm271_vm2 = vcmp.eq.s32.totalorder %v1441_v51, %v1495_v58  ;;  %vm112_vm10 = vcmp.eq.s32.totalorder %v1429_v46, %v1431_v47  ;;  %vm211_vm12 = vcmp.eq.s32.totalorder %v1429_v46, %v1459_v54 }
  0xc0   :  { %vm286_vm4 = vmor %vm234_vm14, %vm266_vm13  ;;  %vm164_vm13 = vcmp.eq.s32.totalorder %v1429_v46, %v1438_v50 }
  0xc1   :  { %vm289_vm7 = vmor %vm1479_vm3, %vm269_vm1  ;;  %v989_v0 = vsel %vm286_vm4, 1.0, %v1330_v41  ;;  %vm263_vm1 = vcmp.eq.s32.totalorder %v1429_v46, %v1477_v56  ;;  %vm268_vm4 = vcmp.eq.s32.totalorder %v1429_v46, %v1495_v58 }
  0xc2   :  { %v992_v60 = vsel %vm289_vm7, 1.0, %v1330_v41  ;;  %vm291_vm8 = vmor %vm239_vm15, %vm271_vm2  ;;  %vm216_vm15 = vcmp.eq.s32.totalorder %v1429_v46, %v1433_v48 }
  0xc3   :  { %v1517_v61 = vpop.permute.xlu1 %73  ;;  %v344_v62 = vpack.c.bf16 %v992_v60, %v987_v59  ;;  %v994_v63 = vsel %vm291_vm8, 1.0, %v1330_v41  ;;  %vm127_vm3 = vmor %vm75_vm0, %vm107_vm11  ;;  %vm82_vm11 = vcmp.eq.s32.totalorder %v1531_v2, %v1457_v53  ;;  %v1581_v19 = vpop.permute.xlu0 %206  ;;  %v1247_v59 = vld [vmem:[#allocation5 + $0x30] sm:$0xff]   ;;  %v1248_v60 = vld [vmem:[#allocation5 + $0x38] sm:$0xff]  }
  0xc4   :  { %vm132_vm9 = vmor %vm80_vm5, %vm112_vm10  ;;  %v346_v1 = vpack.c.bf16 %v994_v63, %v989_v0  ;;  %vm77_vm5 = vcmp.eq.s32.totalorder %v1531_v2, %v1443_v52  ;;  %vm161_vm10 = vcmp.eq.s32.totalorder %v1531_v2, %v1427_v45 }
  0xc5   :  { %709 = vmatprep.mubr.bf16.mxu0 %v344_v62  ;;  %vm179_vm14 = vmor %vm127_vm3, %vm159_vm6  ;;  %vm109_vm6 = vcmp.eq.s32.totalorder %v1531_v2, %v1425_v44 }
  0xc6   :  { %758 = vmatprep.mubr.bf16.mxu1 %v346_v1  ;;  %vm184_vm0 = vmor %vm132_vm9, %vm164_vm13  ;;  %vm114_vm9 = vcmp.eq.s32.totalorder %v1531_v2, %v1431_v47 }
  0xc7   :  { %vm231_vm2 = vmor %vm179_vm14, %vm211_vm12  ;;  %vm213_vm14 = vcmp.eq.s32.totalorder %v1531_v2, %v1459_v54 }
  0xc8   :  { %v1537_v3 = vpop.permute.xlu1 %102  ;;  %vm236_vm7 = vmor %vm184_vm0, %vm216_vm15  ;;  %vm166_vm15 = vcmp.eq.s32.totalorder %v1531_v2, %v1438_v50  ;;  %v1612_v24 = vpop.permute.xlu0 %261 }
  0xc9   :  { %vm283_vm8 = vmor %vm231_vm2, %vm263_vm1  ;;  %vm218_vm1 = vcmp.eq.s32.totalorder %v1531_v2, %v1433_v48 }
  0xca   :  { %vm288_vm3 = vmor %vm236_vm7, %vm268_vm4  ;;  %v986_v4 = vsel %vm283_vm8, 1.0, %v1330_v41  ;;  %vm265_vm4 = vcmp.eq.s32.totalorder %v1531_v2, %v1477_v56  ;;  %vm270_vm7 = vcmp.eq.s32.totalorder %v1531_v2, %v1495_v58 }
  0xcb   :  { %v991_v5 = vsel %vm288_vm3, 1.0, %v1330_v41  ;;  %vm129_vm12 = vmor %vm77_vm5, %vm109_vm6  ;;  %vm118_vm3 = vcmp.eq.s32.totalorder %v1436_v49, %v1537_v3 }
  0xcc   :  { %v343_v6 = vpack.c.bf16 %v991_v5, %v986_v4  ;;  %vm134_vm13 = vmor %vm82_vm11, %vm114_vm9  ;;  %vm89_vm9 = vcmp.eq.s32.totalorder %v1573_v15, %v1561_v9  ;;  %v434_v4 = vld [vmem:[%s1821_s2 + $0x8] sm:$0xff] }
  0xcd   :  { %v1553_v7 = vpop.permute.xlu1 %154  ;;  %vm181_vm0 = vmor %vm129_vm12, %vm161_vm10  ;;  %vm121_vm10 = vcmp.eq.s32.totalorder %v1573_v15, %v1537_v3  ;;  %vm126_vm12 = vcmp.eq.s32.totalorder %v1573_v15, %v1568_v12 }
  0xce   :  { %710 = vmatmul.mubr.bf16.vlgmr.msra.gmra.mrb[0].mxu0 %v343_v6  ;;  %vm186_vm2 = vmor %vm134_vm13, %vm166_vm15  ;;  %vm94_vm13 = vcmp.eq.s32.totalorder %v1573_v15, %v1517_v61  ;;  %vm86_vm15 = vcmp.eq.s32.totalorder %v1436_v49, %v1561_v9 }
  0xcf   :  { %vm233_vm5 = vmor %vm181_vm0, %vm213_vm14  ;;  %1135 = vmatpush3.bf16.msra.mxu0 %v1421_v42  ;;  %vm170_vm14 = vcmp.eq.s32.totalorder %v1436_v49, %v1553_v7  ;;  %vm123_vm0 = vcmp.eq.s32.totalorder %v1436_v49, %v1568_v12 }
  0xd0   :  { %vm238_vm11 = vmor %vm186_vm2, %vm218_vm1  ;;  %1136 = vmatprep.subr.bf16.mxu0 %v1234_v8  ;;  %vm91_vm1 = vcmp.eq.s32.totalorder %v1436_v49, %v1517_v61 }
  0xd1   :  { %v1566_v10 = vpop.permute.xlu1 %157  ;;  %vm285_vm8 = vmor %vm233_vm5, %vm265_vm4 }
  0xd2   :  { %vm290_vm6 = vmor %vm238_vm11, %vm270_vm7  ;;  %v988_v13 = vsel %vm285_vm8, 1.0, %v1330_v41  ;;  %vm175_vm4 = vcmp.eq.s32.totalorder %v1436_v49, %v1566_v10  ;;  %vm222_vm8 = vcmp.eq.s32.totalorder %v1436_v49, %v1581_v19 }
  0xd3   :  { %v993_v14 = vsel %vm290_vm6, 1.0, %v1330_v41  ;;  %1137 = vmatpush3.bf16.msra.mxu0 %v1234_v8  ;;  %vm1597_vm2 = vmor %vm89_vm9, %vm121_vm10 }
  0xd4   :  { %v345_v16 = vpack.c.bf16 %v993_v14, %v988_v13  ;;  %1138 = vmatprep.subr.bf16.mxu0 %v1235_v11  ;;  %vm138_vm5 = vmor %vm86_vm15, %vm118_vm3  ;;  %vm173_vm15 = vcmp.eq.s32.totalorder %v1573_v15, %v1553_v7 }
  0xd5   :  { %vm1608_vm7 = vmor %vm94_vm13, %vm126_vm12  ;;  %vm279_vm12 = vcmp.eq.s32.totalorder %v1436_v49, %v1612_v24 }
  0xd6   :  { %v1575_v18 = vpop.permute.xlu1 %209  ;;  %759 = vmatmul.mubr.bf16.vlgmr.msra.gmra.mrb[0].mxu1 %v345_v16  ;;  %vm190_vm11 = vmor %vm138_vm5, %vm170_vm14 }
  0xd7   :  { %1139 = vmatpush3.bf16.msra.mxu0 %v1235_v11  ;;  %vm143_vm6 = vmor %vm91_vm1, %vm123_vm0  ;;  %vm227_vm10 = vcmp.eq.s32.totalorder %v1436_v49, %v1575_v18  ;;  %vm125_vm0 = vcmp.eq.s32.totalorder %v1441_v51, %v1568_v12  ;;  %vm93_vm1 = vcmp.eq.s32.totalorder %v1441_v51, %v1517_v61 }
  0xd8   :  { %1140 = vmatprep.subr.bf16.mxu0 %v1236_v17  ;;  %vm195_vm9 = vmor %vm143_vm6, %vm175_vm4  ;;  %vm178_vm6 = vcmp.eq.s32.totalorder %v1573_v15, %v1566_v10 }
  0xd9   :  { %vm242_vm13 = vmor %vm190_vm11, %vm222_vm8  ;;  %vm88_vm11 = vcmp.eq.s32.totalorder %v1441_v51, %v1561_v9  ;;  %vm172_vm8 = vcmp.eq.s32.totalorder %v1441_v51, %v1553_v7 }
  0xda   :  { %vm247_vm5 = vmor %vm195_vm9, %vm227_vm10  ;;  %vm177_vm10 = vcmp.eq.s32.totalorder %v1441_v51, %v1566_v10 }
  0xdb   :  { %v1603_v22 = vpop.permute.xlu1 %258  ;;  %1141 = vmatpush3.bf16.msra.mxu0 %v1236_v17  ;;  %vm299_vm14 = vmor %vm247_vm5, %vm279_vm12  ;;  %vm229_vm5 = vcmp.eq.s32.totalorder %v1441_v51, %v1575_v18 }
  0xdc   :  { %1142 = vmatprep.subr.bf16.mxu0 %v1237_v20  ;;  %vm274_vm3 = vcmp.eq.s32.totalorder %v1436_v49, %v1603_v22  ;;  %vm1641_vm9 = vmor %vm1597_vm2, %vm173_vm15  ;;  %v1002_v29 = vsel %vm299_vm14, 1.0, %v1330_v41  ;;  %vm224_vm2 = vcmp.eq.s32.totalorder %v1441_v51, %v1581_v19 }
  0xdd   :  { %vm294_vm4 = vmor %vm242_vm13, %vm274_vm3  ;;  %v1835_v28 = vsel %vm1641_vm9, 4294967295, %v1834_v28  ;;  %vm1836_vm3 = vcmp.eq.s32.totalorder %v1441_v51, %v1537_v3 }
  0xde   :  { %v997_v27 = vsel %vm294_vm4, 1.0, %v1330_v41  ;;  %vm140_vm13 = vmor %vm88_vm11, %vm1836_vm3  ;;  %vm276_vm4 = vcmp.eq.s32.totalorder %v1441_v51, %v1603_v22  ;;  %vm117_vm11 = vcmp.eq.s32.totalorder %v1429_v46, %v1537_v3  ;;  %vm90_vm3 = vcmp.eq.s32.totalorder %v1429_v46, %v1517_v61 }
  0xdf   :  { %1143 = vmatpush3.bf16.msra.mxu0 %v1237_v20  ;;  %v349_v30 = vpack.c.bf16 %v1002_v29, %v997_v27  ;;  %vm145_vm12 = vmor %vm93_vm1, %vm125_vm0  ;;  %v435_v20 = vld [vmem:[%s1821_s2 + $0x10] sm:$0xff] }
  0xe0   :  { %1144 = vmatprep.subr.bf16.mxu0 %v1238_v25  ;;  %vm1659_vm15 = vmor %vm1608_vm7, %vm178_vm6  ;;  %vm281_vm7 = vcmp.eq.s32.totalorder %v1441_v51, %v1612_v24  ;;  %vm122_vm6 = vcmp.eq.s32.totalorder %v1429_v46, %v1568_v12 }
  0xe1   :  { %vm192_vm14 = vmor %vm140_vm13, %vm172_vm8  ;;  %717 = vmatprep.mubr.bf16.mxu0 %v349_v30 }
  0xe2   :  { %vm197_vm0 = vmor %vm145_vm12, %vm177_vm10  ;;  %vm85_vm10 = vcmp.eq.s32.totalorder %v1429_v46, %v1561_v9  ;;  %vm169_vm12 = vcmp.eq.s32.totalorder %v1429_v46, %v1553_v7 }
  0xe3   :  { %1145 = vmatpush3.bf16.msra.mxu0 %v1238_v25  ;;  %vm244_vm1 = vmor %vm192_vm14, %vm224_vm2  ;;  %vm225_vm14 = vcmp.eq.s32.totalorder %v1573_v15, %v1581_v19 }
  0xe4   :  { %1146 = vmatprep.subr.bf16.mxu0 %v1239_v26  ;;  %vm249_vm8 = vmor %vm197_vm0, %vm229_vm5  ;;  %vm174_vm5 = vcmp.eq.s32.totalorder %v1429_v46, %v1566_v10  ;;  %vm230_vm0 = vcmp.eq.s32.totalorder %v1573_v15, %v1575_v18 }
  0xe5   :  { %vm296_vm13 = vmor %vm244_vm1, %vm276_vm4 }
  0xe6   :  { %vm301_vm2 = vmor %vm249_vm8, %vm281_vm7  ;;  %v999_v33 = vsel %vm296_vm13, 1.0, %v1330_v41  ;;  %vm221_vm7 = vcmp.eq.s32.totalorder %v1429_v46, %v1581_v19  ;;  %vm226_vm13 = vcmp.eq.s32.totalorder %v1429_v46, %v1575_v18 }
  0xe7   :  { %1147 = vmatpush3.bf16.msra.mxu0 %v1239_v26  ;;  %v1004_v34 = vsel %vm301_vm2, 1.0, %v1330_v41  ;;  %vm137_vm4 = vmor %vm85_vm10, %vm117_vm11  ;;  %vm1841_vm2 = vnez %v1835_v28  ;;  %vm273_vm11 = vcmp.eq.s32.totalorder %v1429_v46, %v1603_v22 }
  0xe8   :  { %1148 = vmatprep.subr.bf16.mxu0 %v1240_v32  ;;  %v351_v35 = vpack.c.bf16 %v1004_v34, %v999_v33  ;;  %vm142_vm1 = vmor %vm90_vm3, %vm122_vm6  ;;  %vm278_vm3 = vcmp.eq.s32.totalorder %v1429_v46, %v1612_v24 }
  0xe9   :  { %vm189_vm8 = vmor %vm137_vm4, %vm169_vm12  ;;  %vm124_vm4 = vcmp.eq.s32.totalorder %v1531_v2, %v1568_v12 }
  0xea   :  { %vm1699_vm9 = vmor %vm1659_vm15, %vm230_vm0  ;;  %766 = vmatprep.mubr.bf16.mxu1 %v351_v35  ;;  %vm119_vm15 = vcmp.eq.s32.totalorder %v1531_v2, %v1537_v3  ;;  %v433_v3 = vld [vmem:[%s1821_s2] sm:$0xff] }
  0xeb   :  { %1149 = vmatpush3.bf16.msra.mxu0 %v1240_v32  ;;  %v1840_v36 = vsel %vm1699_vm9, 4294967295, %v1839_v36  ;;  %vm1705_vm10 = vmor %vm1841_vm2, %vm225_vm14  ;;  %vm92_vm14 = vcmp.eq.s32.totalorder %v1531_v2, %v1517_v61  ;;  %vm87_vm9 = vcmp.eq.s32.totalorder %v1531_v2, %v1561_v9 }
  0xec   :  { %vm194_vm6 = vmor %vm142_vm1, %vm174_vm5  ;;  %vm171_vm5 = vcmp.eq.s32.totalorder %v1531_v2, %v1553_v7 }
  0xed   :  { %vm241_vm12 = vmor %vm189_vm8, %vm221_vm7  ;;  %vm176_vm7 = vcmp.eq.s32.totalorder %v1531_v2, %v1566_v10 }
  0xee   :  { %vm246_vm0 = vmor %vm194_vm6, %vm226_vm13  ;;  %vm277_vm13 = vcmp.eq.s32.totalorder %v1573_v15, %v1603_v22  ;;  %vm223_vm6 = vcmp.eq.s32.totalorder %v1531_v2, %v1581_v19 }
  0xef   :  { %vm293_vm2 = vmor %vm241_vm12, %vm273_vm11 }
  0xf0   :  { %vm298_vm1 = vmor %vm246_vm0, %vm278_vm3  ;;  %v996_v38 = vsel %vm293_vm2, 1.0, %v1330_v41  ;;  %vm228_vm3 = vcmp.eq.s32.totalorder %v1531_v2, %v1575_v18  ;;  %vm282_vm0 = vcmp.eq.s32.totalorder %v1573_v15, %v1612_v24  ;;  %vm275_vm2 = vcmp.eq.s32.totalorder %v1531_v2, %v1603_v22 }
  0xf1   :  { %v1001_v39 = vsel %vm298_vm1, 1.0, %v1330_v41  ;;  %vm139_vm8 = vmor %vm87_vm9, %vm119_vm15  ;;  %vm280_vm15 = vcmp.eq.s32.totalorder %v1531_v2, %v1612_v24 }
  0xf2   :  { %v348_v40 = vpack.c.bf16 %v1001_v39, %v996_v38  ;;  %vm144_vm11 = vmor %vm92_vm14, %vm124_vm4 }
  0xf3   :  { %vm191_vm12 = vmor %vm139_vm8, %vm171_vm5  ;;  %vm79_vm5 = vcmp.eq.s32.totalorder %v1573_v15, %v1443_v52  ;;  %vm84_vm8 = vcmp.eq.s32.totalorder %v1573_v15, %v1457_v53  ;;  %v1241_v53 = vld [vmem:[#allocation5] sm:$0xff]  }
  0xf4   :  { %718 = vmatmul.mubr.bf16.gmra.mrb[4].mxu0 %v348_v40  ;;  %vm196_vm9 = vmor %vm144_vm11, %vm176_vm7  ;;  %vm1846_vm7 = vnez %v1840_v36  ;;  %1155 = vmatpush3.bf16.msra.mxu1 %v1241_v53 }
  0xf5   :  { %vm1741_vm4 = vmor %vm1705_vm10, %vm277_vm13  ;;  %vm111_vm13 = vcmp.eq.s32.totalorder %v1573_v15, %v1425_v44  ;;  %1156 = vmatprep.subr.bf16.mxu1 %v1330_v41 }
  0xf6   :  { %vm243_vm14 = vmor %vm191_vm12, %vm223_vm6  ;;  %vm163_vm6 = vcmp.eq.s32.totalorder %v1573_v15, %v1427_v45  ;;  %v1000_v44 = vsel %vm1741_vm4, 1.0, %v1330_v41  ;;  %vm1331_vm4 = vmmov 0  }
  0xf7   :  { %vm248_vm1 = vmor %vm196_vm9, %vm228_vm3  ;;  %vm116_vm3 = vcmp.eq.s32.totalorder %v1573_v15, %v1431_v47 }
  0xf8   :  { %vm1751_vm11 = vmor %vm1846_vm7, %vm282_vm0 }
  0xf9   :  { %v1848_v43 = vsel %vm1751_vm11, 4294967295, %v1847_v43  ;;  %vm295_vm10 = vmor %vm243_vm14, %vm275_vm2  ;;  %vm215_vm2 = vcmp.eq.s32.totalorder %v1573_v15, %v1459_v54  ;;  %vm168_vm14 = vcmp.eq.s32.totalorder %v1573_v15, %v1438_v50  ;;  %v1242_v54 = vld [vmem:[#allocation5 + $0x8] sm:$0xff]  }
  0xfa   :  { %vm300_vm12 = vmor %vm248_vm1, %vm280_vm15  ;;  %v998_v46 = vsel %vm295_vm10, 1.0, %v1330_v41  ;;  %vm220_vm15 = vcmp.eq.s32.totalorder %v1573_v15, %v1433_v48  ;;  %vm267_vm10 = vcmp.eq.s32.totalorder %v1573_v15, %v1477_v56  ;;  %1157 = vmatpush3.bf16.msra.mxu1 %v1242_v54  ;;  %v1244_v56 = vld [vmem:[#allocation5 + $0x18] sm:$0xff]  }
  0xfb   :  { %v1003_v49 = vsel %vm300_vm12, 1.0, %v1330_v41  ;;  %vm131_vm9 = vmor %vm79_vm5, %vm111_vm13  ;;  %vm272_vm5 = vcmp.eq.s32.totalorder %v1573_v15, %v1495_v58  ;;  %1158 = vmatprep.subr.bf16.mxu1 %v1330_v41  ;;  %v1246_v58 = vld [vmem:[#allocation5 + $0x28] sm:$0xff]  }
  0xfc   :  { %v350_v51 = vpack.c.bf16 %v1003_v49, %v998_v46  ;;  %vm136_vm0 = vmor %vm84_vm8, %vm116_vm3  ;;  %vm855_vm3 = vcmask 1041408  }
  0xfd   :  { %vm183_vm7 = vmor %vm131_vm9, %vm163_vm6  ;;  %vm1849_vm6 = vnez %v1848_v43 }
  0xfe   :  { %767 = vmatmul.mubr.bf16.gmra.mrb[4].mxu1 %v350_v51  ;;  %vm188_vm1 = vmor %vm136_vm0, %vm168_vm14  ;;  %v1005_v48 = vsel %vm1849_vm6, 1.0, %v1330_v41 }
  0xff   :  { %vm235_vm11 = vmor %vm183_vm7, %vm215_vm2  ;;  %v352_v52 = vpack.c.bf16 %v1005_v48, %v1000_v44  ;;  %1170 = vmatprep.mubr.msk.bf16.mxu1 %vm1331_vm4, %v1330_v41  ;;  %1159 = vmatpush3.bf16.msra.mxu1 %v1243_v55 }
 0x100   :  { %vm240_vm8 = vmor %vm188_vm1, %vm220_vm15  ;;  %1160 = vmatprep.subr.bf16.mxu1 %v1330_v41 }
 0x101   :  { %vm287_vm13 = vmor %vm235_vm11, %vm267_vm10  ;;  %vm852_vm11 = vcmask 1041409  }
 0x102   :  { %vm292_vm12 = vmor %vm240_vm8, %vm272_vm5  ;;  %v990_v45 = vsel %vm287_vm13, 1.0, %v1330_v41 }
 0x103   :  { %v995_v47 = vsel %vm292_vm12, 1.0, %v1330_v41  ;;  %1161 = vmatpush3.bf16.msra.mxu1 %v1244_v56  ;;  %vm1056_vm9 = vmpackc.low %vm855_vm3, %vm855_vm3 }
 0x104   :  { %v347_v50 = vpack.c.bf16 %v995_v47, %v990_v45  ;;  %1162 = vmatprep.subr.bf16.mxu1 %v1330_v41 }
 0x106   :  { %1150 = vmatprep.mubr.bf16.mxu0 %v347_v50 }
 0x107   :  { %1151 = vmatmul.mubr.bf16.vlgmr.msra.gmra.mrb[8].mxu0 %v352_v52  ;;  %1163 = vmatpush3.bf16.msra.mxu1 %v1245_v57  ;;  %v1046_v52 = vld [vmem:[%s1822_s3] ss:$0 sm:$0xff]  ;;  %s976_s3 = sshll.u32 %s1332_s15, 4  ;;  %s977_s3 = int_to_ptr.vmem [resolvable:$true] %s976_s3 }
 0x108   :  { %1164 = vmatprep.subr.bf16.mxu1 %v1330_v41  ;;  %s1293_s16 = scalar_lea.vmem %s977_s3, 128  ;;  %p1298_p3 = scmp.lt.s32.totalorder %s977_s3, %s977_s3 }
 0x109   :  { %p1294_p2 = scmp.ne.s32.totalorder %s977_s3, %s1293_s16  ;;  %p1299_p4 = scmp.lt.s32.totalorder %s1293_s16, %s1293_s16 }
 0x10b   :  { %1165 = vmatpush3.bf16.msra.mxu1 %v1246_v58  ;;  %p1300_p5 = por %p1299_p4, %p1298_p3 }
 0x10c   :  { %1166 = vmatprep.subr.bf16.mxu1 %v1330_v41 }
 0x10d   :  { %p1301_p6 = pnand %p1300_p5, %p1294_p2 }
 0x10f   :  { %1167 = vmatpush3.bf16.msra.mxu1 %v1247_v59 }
 0x110   :  { %1168 = vmatprep.subr.bf16.mxu1 %v1330_v41 }
 0x113   :  { %1169 = vmatpush3.bf16.msra.mxu1 %v1248_v60 }
 0x1a1   :  { %v1075_v61 = vpop.f32.mrb[0].mxu0 }
 0x1a2   :  { %v1076_v62 = vpop.f32.mrb[1].mxu0 }
 0x1a3   :  { %v1077_v63 = vadd.f32 %v1076_v62, %v1075_v61  ;;  %v1078_v0 = vpop.f32.mrb[2].mxu0 }
 0x1a4   :  { %v1079_v1 = vpop.f32.mrb[3].mxu0 }
 0x1a5   :  { %v1080_v2 = vadd.f32 %v1079_v1, %v1078_v0  ;;  %v712_v6 = vadd.f32 %v1077_v63, %v433_v3  ;;  %v1047_v63 = vld [vmem:[%s1824_s5] ss:$0 sm:$0xff] }
 0x1a7   :  { %v715_v9 = vadd.f32 %v1080_v2, %v434_v4 }
 0x1a9   :  { %v1103_v5 = vpop.f32.mrb[0].mxu1 }
 0x1aa   :  { %v1104_v7 = vpop.f32.mrb[1].mxu1 }
 0x1ab   :  { %v1105_v8 = vadd.f32 %v1104_v7, %v1103_v5  ;;  %v1106_v41 = vpop.f32.mrb[2].mxu1 }
 0x1ac   :  { %v1107_v10 = vpop.f32.mrb[3].mxu1 }
 0x1ad   :  { %v1108_v11 = vadd.f32 %v1107_v10, %v1106_v41  ;;  %v761_v12 = vadd.f32 %v1105_v8, %v712_v6 }
 0x1af   :  { %v764_v13 = vadd.f32 %v1108_v11, %v715_v9 }
 0x1c7   :  { %v1081_v14 = vpop.f32.mrb[4].mxu0 }
 0x1c8   :  { %v1082_v15 = vpop.f32.mrb[5].mxu0 }
 0x1c9   :  { %v1083_v16 = vadd.f32 %v1082_v15, %v1081_v14  ;;  %v1084_v17 = vpop.f32.mrb[6].mxu0 }
 0x1ca   :  { %v1085_v18 = vpop.f32.mrb[7].mxu0 }
 0x1cb   :  { %v1086_v19 = vadd.f32 %v1085_v18, %v1084_v17  ;;  %v720_v23 = vadd.f32 %v1083_v16, %v435_v20 }
 0x1cd   :  { %v723_v27 = vadd.f32 %v1086_v19, %v436_v21 }
 0x1d1   :  { %v1109_v22 = vpop.f32.mrb[4].mxu1 }
 0x1d2   :  { %v1110_v24 = vpop.f32.mrb[5].mxu1 }
 0x1d3   :  { %v1111_v25 = vadd.f32 %v1110_v24, %v1109_v22  ;;  %v1112_v26 = vpop.f32.mrb[6].mxu1 }
 0x1d4   :  { %v1113_v28 = vpop.f32.mrb[7].mxu1 }
 0x1d5   :  { %v1114_v29 = vadd.f32 %v1113_v28, %v1112_v26  ;;  %v769_v30 = vadd.f32 %v1111_v25, %v720_v23 }
 0x1d7   :  { %v772_v31 = vadd.f32 %v1114_v29, %v723_v27 }
 0x1da   :  { %v1152_v32 = vpop.f32.mrb[8].mxu0 }
 0x1db   :  { %v818_v33 = vadd.f32 %v1152_v32, %v769_v30  ;;  %v809_v34 = vpop.f32.mrb[9].mxu0 }
 0x1dc   :  { %v810_v35 = vadd.f32 %v809_v34, %v761_v12  ;;  %v1153_v36 = vpop.f32.mrb[10].mxu0 }
 0x1dd   :  { %v821_v37 = vadd.f32 %v1153_v36, %v772_v31  ;;  %v812_v38 = vpop.f32.mrb[11].mxu0 }
 0x1de   :  { %v813_v39 = vadd.f32 %v812_v38, %v764_v13 }
 0x1df   :  { %v831_v40 = vmax.f32 %v818_v33, %v821_v37 }
 0x1e0   :  { %v824_v42 = vmax.f32 %v810_v35, %v813_v39 }
 0x1e1   :  { %v832_v43 = vrot.slane %v831_v40, 4 }
 0x1e2   :  { %v825_v46 = vrot.slane %v824_v42, 4 }
 0x1e3   :  { %v833_v49 = vmax.f32 %v831_v40, %v832_v43 }
 0x1e4   :  { %v826_v51 = vmax.f32 %v824_v42, %v825_v46 }
 0x1e5   :  { %v834_v44 = vrot.slane %v833_v49, 2 }
 0x1e6   :  { %v827_v45 = vrot.slane %v826_v51, 2 }
 0x1e7   :  { %v835_v47 = vmax.f32 %v833_v49, %v834_v44 }
 0x1e8   :  { %v828_v48 = vmax.f32 %v826_v51, %v827_v45 }
 0x1e9   :  { %v836_v50 = vrot.slane %v835_v47, 1 }
 0x1ea   :  { %v829_v53 = vrot.slane %v828_v48, 1 }
 0x1eb   :  { %v837_v54 = vmax.f32 %v835_v47, %v836_v50 }
 0x1ec   :  { %v830_v55 = vmax.f32 %v828_v48, %v829_v53 }
 0x1ed   :  { %v846_v56 = vadd.f32 %v1046_v52, %v837_v54 }
 0x1ee   :  { %v845_v57 = vadd.f32 %v1046_v52, %v830_v55 }
 0x1ef   :  { %v848_v58 = vmax.f32 %v846_v56, 0.0 }
 0x1f0   :  { %v847_v59 = vmax.f32 %v845_v57, 0.0 }
 0x1f1   :  { %v851_v60 = vrot.slane %v848_v58, 7 }
 0x1f3   :  { %v853_v61 = vsel %vm852_vm11, %v851_v60, %v847_v59 }
 0x1f4   :  { %v1057_v62 = vpack.c.bf16 %v853_v61, %v853_v61 }
 0x1f6   :  { %1171 = vmatmul.mubr.msk.bf16.vlgmr.msra.gmra.mrb[8].mxu1 %vm1056_vm9, %v1057_v62 }
 0x2c9   :  { %v963_v0 = vpop.f32.mrb[8].mxu1 }
 0x2ca   :  { %v964_v1 = vadd.f32 %v1047_v63, %v963_v0  ;;  %v1172_v2 = vpop.f32.mrb[9].mxu1 }
 0x2cb   :  { %v966_v3 = vpop.f32.mrb[10].mxu1 }
 0x2cc   :  { %969 = vst [vmem:[#allocation7] sm:$0xff] %v964_v1  ;;  %v1173_v4 = vpop.f32.mrb[11].mxu1 }
 0x2cd   :  { %1304 = shalt.err (!%p1301_p6)
}
 0x2ce   :  { %s1305_s5 = scalar_lea.hbm %s1825_s6, 128 }
 0x2cf   :  { %p1306_p7 = scmp.ne.s32.totalorder %s1825_s6, %s1305_s5  ;;  %p1309_p8 = scmp.lt.u32.totalorder %s1305_s5, %s1825_s6 }
 0x2d1   :  { %p1311_p9 = pnand %p1309_p8, %p1306_p7 }
 0x2d3   :  { %1314 = shalt.err (!%p1311_p9)
}
 0x2d4   :  { %979 = dma.vmem_to_hbm [thread:$0]  %s977_s3, 128, %s1825_s6, [#allocation4]  }
 0x2d5   :  { %1319 = dma.done.wait [#allocation4], 128  }
 0x2d6   :  { %1320 = vsyncadd [#allocation4], 4294967168 }
 0x2d7   :  { %983 = vsyncpa [#allocation3], 1 }
 0x2d8   :  { %984 = vsyncpa [#allocation6], 1 }
 0x2d9   :  { %985 = vsyncpa [#allocation4], 1 }

</bundles_post_ra>
